<compile_context>
chip_gen: v6e
topology: v6e:2x2x1
jax: 0.10.0
libtpu: 0.0.40
codegen_flags: <defaults>
</compile_context>

<pallas_src>
import jax
import jax.numpy as jnp
from jax import lax
from jax.experimental import pallas as pl
from jax.experimental.pallas import tpu as pltpu

V_TH = 0.15
TAU = 2.0
DECAY = 1.0 - 1.0 / TAU
ALPHA = 1.0 / (2.0 ** 0.5)
BN_EPS = 1e-5

LANES = 128
LIF_TILE_M1 = 512      # sublane tile of the flattened feature axis (time carried in-block)
CONV_ROW_TILE = 512    # output rows (T*N*Ho*Wo) per conv / affine grid step
VMEM_LIMIT = 32 * 1024 * 1024


# ----------------------------- LIF neuron kernel -----------------------------
def lif_kernel(x_ref, s_ref):
    # x_ref: (T, TILE_M1, 128) f32   s_ref: (T, TILE_M1, 128) int8
    T = x_ref.shape[0]

    def body(t, v):
        v = DECAY * v + x_ref[t]                     # decay_input=False, v_reset=0
        spike = v >= V_TH                            # heaviside fire
        # {0,1} spikes, stored as int8 (exact); select + i32->i8 truncate.
        s_ref[t] = jnp.where(spike, 1, 0).astype(s_ref.dtype)
        return jnp.where(spike, 0.0, v)              # hard reset to 0

    lax.fori_loop(0, T, body, jnp.zeros(x_ref.shape[1:], jnp.float32))


def lif_forward(x_tm, tile_m1):
    T, M1p, L = x_tm.shape
    grid = (M1p // tile_m1,)
    return pl.pallas_call(
        lif_kernel,
        out_shape=jax.ShapeDtypeStruct((T, M1p, L), jnp.int8),
        grid=grid,
        in_specs=[pl.BlockSpec((T, tile_m1, L), lambda i: (0, i, 0))],
        out_specs=pl.BlockSpec((T, tile_m1, L), lambda i: (0, i, 0)),
        compiler_params=pltpu.CompilerParams(
            dimension_semantics=("parallel",),
            vmem_limit_bytes=VMEM_LIMIT),
    )(x_tm)


# -------------- stride-2 3x3 conv as one folded-K matmul + BN stats ----------
def conv_bn_stats_kernel(t_ref, w_ref, y_ref, stats_ref):
    # t_ref: (B_ROWS, 9*Cin) int8   w_ref: (9*Cin, Np) bf16 (resident across grid)
    # y_ref: (B_ROWS, Np) f32       stats_ref: (1, 2, Np) f32 per-block partial sums
    taps = t_ref[...].astype(jnp.float32).astype(jnp.bfloat16)   # i8 -> f32 -> bf16 (VPU)
    y = jnp.dot(taps, w_ref[...], preferred_element_type=jnp.float32)
    y_ref[...] = y
    ssum = jnp.sum(y, axis=0, keepdims=True)                     # (1, Np)
    ssq = jnp.sum(y * y, axis=0, keepdims=True)                  # (1, Np)
    stats_ref[0] = jnp.concatenate([ssum, ssq], axis=0)


def conv_stats_forward(taps, w_pad, b_rows):
    rows_pad, K = taps.shape
    Np = w_pad.shape[1]
    grid = (rows_pad // b_rows,)
    return pl.pallas_call(
        conv_bn_stats_kernel,
        out_shape=(jax.ShapeDtypeStruct((rows_pad, Np), jnp.float32),
                   jax.ShapeDtypeStruct((grid[0], 2, Np), jnp.float32)),
        grid=grid,
        in_specs=[pl.BlockSpec((b_rows, K), lambda g: (g, 0)),
                  pl.BlockSpec((K, Np), lambda g: (0, 0))],   # weights stay resident
        out_specs=(pl.BlockSpec((b_rows, Np), lambda g: (g, 0)),
                   pl.BlockSpec((1, 2, Np), lambda g: (g, 0, 0))),
        compiler_params=pltpu.CompilerParams(
            dimension_semantics=("parallel",),
            vmem_limit_bytes=VMEM_LIMIT),
    )(taps, w_pad)


# ------------------- tdBN normalize: tiled per-channel affine ----------------
def affine_kernel(y_ref, sc_ref, sh_ref, o_ref):
    o_ref[...] = y_ref[...] * sc_ref[...] + sh_ref[...]


def affine_forward(y, scale, shift, b_rows):
    R, Np = y.shape
    grid = (R // b_rows,)
    return pl.pallas_call(
        affine_kernel,
        out_shape=jax.ShapeDtypeStruct((R, Np), jnp.float32),
        grid=grid,
        in_specs=[pl.BlockSpec((b_rows, Np), lambda g: (g, 0)),
                  pl.BlockSpec((1, Np), lambda g: (0, 0)),
                  pl.BlockSpec((1, Np), lambda g: (0, 0))],
        out_specs=pl.BlockSpec((b_rows, Np), lambda g: (g, 0)),
        input_output_aliases={0: 0},     # normalize in place: y buffer is reused
        compiler_params=pltpu.CompilerParams(
            dimension_semantics=("parallel",),
            vmem_limit_bytes=VMEM_LIMIT),
    )(y, scale.reshape(1, Np), shift.reshape(1, Np))


# ------------------------------- full forward --------------------------------
def downsampling_forward(x, w_hwio, gamma, beta):
    # x: [T, N, C, H, W] f32 ; w_hwio: [3, 3, C, 2C]
    T, N, C, H, W = x.shape
    Cout = w_hwio.shape[-1]
    Ho, Wo = (H + 1) // 2, (W + 1) // 2

    # ---- 1) LIF spiking over time (tiled + pipelined elementwise pass) ------
    M = N * C * H * W
    M1 = pl.cdiv(M, LANES)
    tile_m1 = M1 if M1 <= LIF_TILE_M1 else LIF_TILE_M1
    m1_pad = pl.cdiv(M1, tile_m1) * tile_m1
    x_flat = jnp.pad(x.reshape(T, M).astype(jnp.float32),
                     ((0, 0), (0, m1_pad * LANES - M)))
    spikes = lif_forward(x_flat.reshape(T, m1_pad, LANES), tile_m1)     # int8 {0,1}
    s = spikes.reshape(T, m1_pad * LANES)[:, :M].reshape(T * N, C, H, W)

    # ---- 2) im2col tap extraction (stride 2, pad 1), kept in int8 -----------
    # TODO(synk): tap extraction stays in XLA; an in-kernel halo-DMA variant
    # would remove the remaining duplicated HBM round trip of the taps.
    s_nhwc = jnp.transpose(s, (0, 2, 3, 1))                 # (TN, H, W, C) int8
    xp = jnp.pad(s_nhwc, ((0, 0), (1, 1), (1, 1), (0, 0)))
    taps = jnp.stack([xp[:, kh:kh + 2 * Ho:2, kw:kw + 2 * Wo:2, :]
                      for kh in range(3) for kw in range(3)],
                     axis=3)                                 # (TN, Ho, Wo, 9, C)
    K = 9 * C
    rows = T * N * Ho * Wo
    taps = taps.reshape(rows, K)

    b_rows = rows if rows <= CONV_ROW_TILE else CONV_ROW_TILE
    rows_pad = pl.cdiv(rows, b_rows) * b_rows
    taps = jnp.pad(taps, ((0, rows_pad - rows), (0, 0)))

    Np = pl.cdiv(Cout, LANES) * LANES                        # lane-dense output
    w_pad = jnp.pad(w_hwio.reshape(K, Cout).astype(jnp.bfloat16),
                    ((0, 0), (0, Np - Cout)))

    y_pad, stats = conv_stats_forward(taps, w_pad, b_rows)   # matmul + partial BN stats

    # ---- 3) tdBN: finish stats (tiny), then tiled per-channel scale/shift ---
    ssum = jnp.sum(stats[:, 0, :], axis=0)                   # (Np,)
    ssq = jnp.sum(stats[:, 1, :], axis=0)
    mean = ssum / rows                                       # padded rows contribute 0
    var = jnp.maximum(ssq / rows - mean * mean, 0.0)         # biased batch variance
    inv = lax.rsqrt(var + BN_EPS)
    gamma_p = jnp.pad(gamma.astype(jnp.float32), (0, Np - Cout))
    beta_p = jnp.pad(beta.astype(jnp.float32), (0, Np - Cout))
    scale = gamma_p * inv
    shift = beta_p - mean * scale
    yb = affine_forward(y_pad, scale, shift, b_rows)

    out = yb[:rows, :Cout].reshape(T, N, Ho, Wo, Cout)
    return jnp.transpose(out, (0, 1, 4, 2, 3))               # [T, N, Cout, Ho, Wo]


# ------------------------------ pure-JAX reference ---------------------------
def reference(x, w_hwio, gamma, beta):
    T, N, C, H, W = x.shape
    Cout = w_hwio.shape[-1]
    v = jnp.zeros((N, C, H, W), jnp.float32)
    spikes = []
    for t in range(T):
        v = DECAY * v + x[t]
        sp = (v >= V_TH).astype(jnp.float32)
        v = v * (1.0 - sp)
        spikes.append(sp)
    s = jnp.stack(spikes).reshape(T * N, C, H, W)
    y = lax.conv_general_dilated(s, w_hwio, window_strides=(2, 2),
                                 padding=((1, 1), (1, 1)),
                                 dimension_numbers=('NCHW', 'HWIO', 'NCHW'))
    mean = y.mean(axis=(0, 2, 3), keepdims=True)
    var = jnp.square(y - mean).mean(axis=(0, 2, 3), keepdims=True)
    y = (y - mean) * lax.rsqrt(var + BN_EPS) * gamma.reshape(1, -1, 1, 1) \
        + beta.reshape(1, -1, 1, 1)
    Ho, Wo = y.shape[-2:]
    return y.reshape(T, N, Cout, Ho, Wo)


if __name__ == "__main__":
    T, N, C, H, W = 4, 2, 4, 16, 16
    Cout = 2 * C

    key = jax.random.PRNGKey(0)
    kx, kw = jax.random.split(key)
    x = jax.random.uniform(kx, (T, N, C, H, W), jnp.float32, minval=0.0, maxval=0.3)
    w_hwio = jax.random.normal(kw, (3, 3, C, Cout), jnp.float32) * 0.2
    gamma = jnp.full((Cout,), ALPHA * V_TH, jnp.float32)   # tdBN weight init
    beta = jnp.zeros((Cout,), jnp.float32)                 # tdBN bias init

    fwd = jax.jit(downsampling_forward)
    out = jax.block_until_ready(fwd(x, w_hwio, gamma, beta))
    ref = jax.block_until_ready(reference(x, w_hwio, gamma, beta))

    assert out.shape == (T, N, Cout, H // 2, W // 2), out.shape
    # Slightly looser atol than pure-f32: conv weights are quantized to bf16 for
    # the MXU (spikes are exact 0/1 in int8); accumulation stays f32.
    err = float(jnp.max(jnp.abs(out - ref)))
    assert jnp.allclose(out, ref, rtol=1e-3, atol=2e-3), err
    print("KERNEL_OK")
</pallas_src>

<mosaic_0001>
module attributes {stable_mosaic.version = 11 : i64} {
  func.func @lif_kernel(%arg0: i32, %arg1: memref<4x16x128xf32, #tpu.memory_space<vmem>>, %arg2: memref<4x16x128xi8, #tpu.memory_space<vmem>>) attributes {dimension_semantics = [#tpu.dimension_semantics<parallel>], iteration_bounds = array<i64: 1>, scalar_prefetch = 0 : i64, scratch_operands = 0 : i64, tpu.core_type = #tpu.core_type<tc>, window_params = [{transform_indices = @transform_0, window_bounds = array<i64: 4, 16, 128>}, {transform_indices = @transform_1, window_bounds = array<i64: 4, 16, 128>}]} {
    %cst = arith.constant 0.000000e+00 : f32
    %0 = vector.broadcast %cst : f32 to vector<16x128xf32>
    %c0_i32 = arith.constant 0 : i32
    %c4_i32 = arith.constant 4 : i32
    %1 = arith.addi %c0_i32, %c4_i32 : i32
    %c1_i32 = arith.constant 1 : i32
    %2 = scf.for %arg3 = %c0_i32 to %1 step %c1_i32 iter_args(%arg4 = %0) -> (vector<16x128xf32>)  : i32 {
      %cst_1 = arith.constant 5.000000e-01 : f32
      %3 = vector.broadcast %cst_1 : f32 to vector<16x128xf32>
      %4 = arith.mulf %3, %arg4 : vector<16x128xf32>
      %5 = arith.index_cast %arg3 : i32 to index
      %c0 = arith.constant 0 : index
      %c0_2 = arith.constant 0 : index
      %6 = vector.load %arg1[%5, %c0, %c0_2] : memref<4x16x128xf32, #tpu.memory_space<vmem>>, vector<1x16x128xf32>
      %7 = vector.shape_cast %6 : vector<1x16x128xf32> to vector<16x128xf32>
      %8 = arith.addf %4, %7 : vector<16x128xf32>
      %cst_3 = arith.constant 1.500000e-01 : f32
      %9 = vector.broadcast %cst_3 : f32 to vector<16x128xf32>
      %10 = arith.cmpf oge, %8, %9 : vector<16x128xf32>
      %c1_i32_4 = arith.constant 1 : i32
      %c0_i32_5 = arith.constant 0 : i32
      %11 = vector.broadcast %c1_i32_4 : i32 to vector<16x128xi32>
      %12 = vector.broadcast %c0_i32_5 : i32 to vector<16x128xi32>
      %13 = arith.select %10, %11, %12 : vector<16x128xi1>, vector<16x128xi32>
      %14 = arith.trunci %13 : vector<16x128xi32> to vector<16x128xi8>
      %15 = arith.index_cast %arg3 : i32 to index
      %c0_6 = arith.constant 0 : index
      %c0_7 = arith.constant 0 : index
      %16 = vector.load %arg2[%15, %c0_6, %c0_7] : memref<4x16x128xi8, #tpu.memory_space<vmem>>, vector<1x16x128xi8>
      %17 = vector.shape_cast %16 : vector<1x16x128xi8> to vector<16x128xi8>
      %18 = vector.shape_cast %14 : vector<16x128xi8> to vector<1x16x128xi8>
      tpu.vector_store %arg2[%15, %c0_6, %c0_7], %18 {strides = array<i32>} : memref<4x16x128xi8, #tpu.memory_space<vmem>>, vector<1x16x128xi8>,
      %cst_8 = arith.constant 0.000000e+00 : f32
      %19 = vector.broadcast %cst_8 : f32 to vector<16x128xf32>
      %20 = arith.select %10, %19, %8 : vector<16x128xi1>, vector<16x128xf32>
      scf.yield %20 : vector<16x128xf32>
    }
    %c4_i32_0 = arith.constant 4 : i32
    return
  }
  func.func @transform_0(%arg0: i32) -> (i32, i32, i32) {
    %c0_i32 = arith.constant 0 : i32
    %c0_i32_0 = arith.constant 0 : i32
    %c0_i32_1 = arith.constant 0 : i32
    return %c0_i32, %arg0, %c0_i32_0 : i32, i32, i32
  }
  func.func @transform_1(%arg0: i32) -> (i32, i32, i32) {
    %c0_i32 = arith.constant 0 : i32
    %c0_i32_0 = arith.constant 0 : i32
    %c0_i32_1 = arith.constant 0 : i32
    return %c0_i32, %arg0, %c0_i32_0 : i32, i32, i32
  }
}

module attributes {stable_mosaic.version = 11 : i64} {
  func.func @conv_bn_stats_kernel(%arg0: i32, %arg1: memref<512x36xi8, #tpu.memory_space<vmem>>, %arg2: memref<36x128xbf16, #tpu.memory_space<vmem>>, %arg3: memref<512x128xf32, #tpu.memory_space<vmem>>, %arg4: memref<1x2x128xf32, #tpu.memory_space<vmem>>) attributes {dimension_semantics = [#tpu.dimension_semantics<parallel>], iteration_bounds = array<i64: 1>, scalar_prefetch = 0 : i64, scratch_operands = 0 : i64, tpu.core_type = #tpu.core_type<tc>, window_params = [{transform_indices = @transform_0, window_bounds = array<i64: 512, 36>}, {pipeline_mode = #tpu.pipeline_mode<synchronous>, transform_indices = @transform_1, window_bounds = array<i64: 36, 128>}, {transform_indices = @transform_2, window_bounds = array<i64: 512, 128>}, {transform_indices = @transform_3, window_bounds = array<i64: 1, 2, 128>}]} {
    %c0 = arith.constant 0 : index
    %c0_0 = arith.constant 0 : index
    %0 = vector.load %arg1[%c0, %c0_0] : memref<512x36xi8, #tpu.memory_space<vmem>>, vector<512x36xi8>
    %1 = arith.sitofp %0 : vector<512x36xi8> to vector<512x36xf32>
    %2 = arith.truncf %1 : vector<512x36xf32> to vector<512x36xbf16>
    %c0_1 = arith.constant 0 : index
    %c0_2 = arith.constant 0 : index
    %3 = vector.load %arg2[%c0_1, %c0_2] : memref<36x128xbf16, #tpu.memory_space<vmem>>, vector<36x128xbf16>
    %cst = arith.constant dense<0.000000e+00> : vector<512x128xf32>
    %4 = tpu.matmul %2, %3, %cst {dimension_numbers = #tpu.dot_dimension_numbers<[1], [0], [0], [1], [0, 0, 1, 1], [], []>} : vector<512x36xbf16>, vector<36x128xbf16>, vector<512x128xf32> -> vector<512x128xf32>
    %c0_3 = arith.constant 0 : index
    %c0_4 = arith.constant 0 : index
    %5 = vector.load %arg3[%c0_3, %c0_4] : memref<512x128xf32, #tpu.memory_space<vmem>>, vector<512x128xf32>
    tpu.vector_store %arg3[%c0_3, %c0_4], %4 {strides = array<i32>} : memref<512x128xf32, #tpu.memory_space<vmem>>, vector<512x128xf32>,
    %cst_5 = arith.constant dense<0.000000e+00> : vector<128xf32>
    %6 = vector.multi_reduction <add>, %4, %cst_5 [0] : vector<512x128xf32> to vector<128xf32>
    %7 = vector.shape_cast %6 : vector<128xf32> to vector<1x128xf32>
    %8 = arith.mulf %4, %4 : vector<512x128xf32>
    %cst_6 = arith.constant dense<0.000000e+00> : vector<128xf32>
    %9 = vector.multi_reduction <add>, %8, %cst_6 [0] : vector<512x128xf32> to vector<128xf32>
    %10 = vector.shape_cast %9 : vector<128xf32> to vector<1x128xf32>
    %11 = tpu.concatenate %7, %10 in 0 : vector<1x128xf32>, vector<1x128xf32> -> vector<2x128xf32>
    %c0_7 = arith.constant 0 : index
    %c0_8 = arith.constant 0 : index
    %c0_9 = arith.constant 0 : index
    %12 = vector.load %arg4[%c0_7, %c0_8, %c0_9] : memref<1x2x128xf32, #tpu.memory_space<vmem>>, vector<1x2x128xf32>
    %13 = vector.shape_cast %12 : vector<1x2x128xf32> to vector<2x128xf32>
    %14 = vector.shape_cast %11 : vector<2x128xf32> to vector<1x2x128xf32>
    tpu.vector_store %arg4[%c0_7, %c0_8, %c0_9], %14 {strides = array<i32>} : memref<1x2x128xf32, #tpu.memory_space<vmem>>, vector<1x2x128xf32>,
    return
  }
  func.func @transform_0(%arg0: i32) -> (i32, i32) {
    %c0_i32 = arith.constant 0 : i32
    %c0_i32_0 = arith.constant 0 : i32
    return %arg0, %c0_i32 : i32, i32
  }
  func.func @transform_1(%arg0: i32) -> (i32, i32) {
    %c0_i32 = arith.constant 0 : i32
    %c0_i32_0 = arith.constant 0 : i32
    %c0_i32_1 = arith.constant 0 : i32
    return %c0_i32, %c0_i32_0 : i32, i32
  }
  func.func @transform_2(%arg0: i32) -> (i32, i32) {
    %c0_i32 = arith.constant 0 : i32
    %c0_i32_0 = arith.constant 0 : i32
    return %arg0, %c0_i32 : i32, i32
  }
  func.func @transform_3(%arg0: i32) -> (i32, i32, i32) {
    %c0_i32 = arith.constant 0 : i32
    %c0_i32_0 = arith.constant 0 : i32
    %c0_i32_1 = arith.constant 0 : i32
    return %arg0, %c0_i32, %c0_i32_0 : i32, i32, i32
  }
}

module attributes {stable_mosaic.version = 11 : i64} {
  func.func @affine_kernel(%arg0: i32, %arg1: memref<512x128xf32, #tpu.memory_space<vmem>>, %arg2: memref<1x128xf32, #tpu.memory_space<vmem>>, %arg3: memref<1x128xf32, #tpu.memory_space<vmem>>, %arg4: memref<512x128xf32, #tpu.memory_space<vmem>>) attributes {dimension_semantics = [#tpu.dimension_semantics<parallel>], iteration_bounds = array<i64: 1>, scalar_prefetch = 0 : i64, scratch_operands = 0 : i64, tpu.core_type = #tpu.core_type<tc>, window_params = [{transform_indices = @transform_0, window_bounds = array<i64: 512, 128>}, {pipeline_mode = #tpu.pipeline_mode<synchronous>, transform_indices = @transform_1, window_bounds = array<i64: 1, 128>}, {pipeline_mode = #tpu.pipeline_mode<synchronous>, transform_indices = @transform_2, window_bounds = array<i64: 1, 128>}, {transform_indices = @transform_3, window_bounds = array<i64: 512, 128>}]} {
    %c0 = arith.constant 0 : index
    %c0_0 = arith.constant 0 : index
    %0 = vector.load %arg1[%c0, %c0_0] : memref<512x128xf32, #tpu.memory_space<vmem>>, vector<512x128xf32>
    %c0_1 = arith.constant 0 : index
    %c0_2 = arith.constant 0 : index
    %1 = vector.load %arg2[%c0_1, %c0_2] : memref<1x128xf32, #tpu.memory_space<vmem>>, vector<1x128xf32>
    %2 = vector.broadcast %1 : vector<1x128xf32> to vector<512x128xf32>
    %3 = arith.mulf %0, %2 : vector<512x128xf32>
    %c0_3 = arith.constant 0 : index
    %c0_4 = arith.constant 0 : index
    %4 = vector.load %arg3[%c0_3, %c0_4] : memref<1x128xf32, #tpu.memory_space<vmem>>, vector<1x128xf32>
    %5 = vector.broadcast %4 : vector<1x128xf32> to vector<512x128xf32>
    %6 = arith.addf %3, %5 : vector<512x128xf32>
    %c0_5 = arith.constant 0 : index
    %c0_6 = arith.constant 0 : index
    %7 = vector.load %arg4[%c0_5, %c0_6] : memref<512x128xf32, #tpu.memory_space<vmem>>, vector<512x128xf32>
    tpu.vector_store %arg4[%c0_5, %c0_6], %6 {strides = array<i32>} : memref<512x128xf32, #tpu.memory_space<vmem>>, vector<512x128xf32>,
    return
  }
  func.func @transform_0(%arg0: i32) -> (i32, i32) {
    %c0_i32 = arith.constant 0 : i32
    %c0_i32_0 = arith.constant 0 : i32
    return %arg0, %c0_i32 : i32, i32
  }
  func.func @transform_1(%arg0: i32) -> (i32, i32) {
    %c0_i32 = arith.constant 0 : i32
    %c0_i32_0 = arith.constant 0 : i32
    %c0_i32_1 = arith.constant 0 : i32
    return %c0_i32, %c0_i32_0 : i32, i32
  }
  func.func @transform_2(%arg0: i32) -> (i32, i32) {
    %c0_i32 = arith.constant 0 : i32
    %c0_i32_0 = arith.constant 0 : i32
    %c0_i32_1 = arith.constant 0 : i32
    return %c0_i32, %c0_i32_0 : i32, i32
  }
  func.func @transform_3(%arg0: i32) -> (i32, i32) {
    %c0_i32 = arith.constant 0 : i32
    %c0_i32_0 = arith.constant 0 : i32
    return %arg0, %c0_i32 : i32, i32
  }
}

</mosaic_0001>

<bundles_post_ra>
// kernel: downsampling_forward.3
= control target key start
LH: loop header
LB: loop body
LE: loop exit
PB: predicated region body
PF: predicated region fallthrough
CT: control target
= control target key end

     0   :  { %v99_v0 = vmov 0.0   ;;  %v103_v1 = vmov 0.0   ;;  %s122_s6 = smov 0   ;;  %s133_s0 = inlined_call_operand.vmem [shape: f32[4,16,128], index: 0, kind: input, shape index: {}]   ;;  %s134_s1 = inlined_call_operand.vmem [shape: s8[4,16,128], index: 1, kind: output, shape index: {}]  }
   0x1 LB: > { %v16_v2 = vmul.f32 0.5, %v105_v1  ;;  %v17_v3 = vmul.f32 0.5, %v101_v0  ;;  %s58_s7 = sshll.u32 %s109_s6, 4  ;;  %s61_s11 = sshll.u32 %s109_s6, 2  ;;  %v111_v8 = vmov 0   ;;  %s109_s6 = sphi %s122_s6, %s13_s6   ;;  %v105_v1 = vphi %v103_v1, %v37_v1   ;;  %v101_v0 = vphi %v99_v0, %v38_v0  }
   0x2   : > { %s19_s10 = scalar_lea.vmem %s133_s0, %s58_s7  ;;  %s34_s14 = scalar_lea.vmem %s134_s1, %s61_s11 }
   0x3   : > { %v20_v4 = vld [vmem:[%s19_s10] sm:$0xff]  ;;  %v21_v5 = vld [vmem:[%s19_s10 + $0x8] sm:$0xff]  ;;  %s13_s6 = sadd.s32 1, %s109_s6  }
   0x4   : > { %v22_v6 = vadd.f32 %v20_v4, %v16_v2  ;;  %v23_v7 = vadd.f32 %v21_v5, %v17_v3  ;;  %p10_p0 = scmp.ge.s32.totalorder %s13_s6, 4  }
   0x6   : > { %vm24_vm0 = vcmp.ge.f32.partialorder %v22_v6, 0.15  ;;  %vm25_vm1 = vcmp.ge.f32.partialorder %v23_v7, 0.15 }
   0x7   : > { %v26_v9 = vsel %vm24_vm0, 1, %v111_v8  ;;  %v37_v1 = vsel %vm24_vm0, 0.0, %v22_v6   ;;  %v27_v10 = vsel %vm25_vm1, 1, %v111_v8  ;;  %v38_v0 = vsel %vm25_vm1, 0.0, %v23_v7  }
   0x8   : > { %v28_v11 = vpack.c.b16 %v26_v9, %v26_v9  ;;  %v30_v12 = vpack.c.b16 %v27_v10, %v27_v10  ;;  %12 = sbr.rel (!%p10_p0) target bundleno = 1 (0x1), region = 33 }
   0xa   : > { %v29_v13 = vpack.c.b8 %v28_v11, %v28_v11  ;;  %v31_v14 = vpack.c.b8 %v30_v12, %v30_v12 }
   0xc   : > { %35 = vst [vmem:[%s34_s14] sm:$0x3] %v29_v13  ;;  %36 = vst [vmem:[%s34_s14 + $0x2] sm:$0x3] %v31_v14 }

// kernel: downsampling_forward.5
= control target key start
LH: loop header
LB: loop body
LE: loop exit
PB: predicated region body
PF: predicated region fallthrough
CT: control target
= control target key end

     0   :  { %s832_s0 = inlined_call_operand.vmem [shape: f32[512,128], index: 0, kind: input, shape index: {}, may-alias: {0,3}]   ;;  %s833_s1 = inlined_call_operand.vmem [shape: f32[1,128], index: 1, kind: input, shape index: {}]   ;;  %s834_s2 = inlined_call_operand.vmem [shape: f32[1,128], index: 2, kind: input, shape index: {}]   ;;  %s835_s3 = inlined_call_operand.vmem [shape: f32[512,128], index: 3, kind: output, shape index: {}, may-alias: {0,3}]  }
   0x1   :  { %v14_v0 = vld [vmem:[%s832_s0] sm:$0xff]  ;;  %v15_v4 = vld [vmem:[%s832_s0 + $0x8] sm:$0xff]  ;;  %v16_v5 = vld [vmem:[%s832_s0 + $0x10] sm:$0xff] }
   0x2   :  { %v316_v1 = vld [vmem:[%s833_s1] ss:$0 sm:$0xff]  ;;  %v17_v6 = vld [vmem:[%s832_s0 + $0x18] sm:$0xff]  ;;  %v19_v11 = vld [vmem:[%s832_s0 + $0x28] sm:$0xff] }
   0x3   :  { %v321_v2 = vld [vmem:[%s834_s2] ss:$0 sm:$0xff]  ;;  %v85_v3 = vmul.f32 %v316_v1, %v14_v0  ;;  %v86_v7 = vmul.f32 %v316_v1, %v15_v4  ;;  %v87_v8 = vmul.f32 %v316_v1, %v16_v5  ;;  %v88_v9 = vmul.f32 %v316_v1, %v17_v6  ;;  %v20_v12 = vld [vmem:[%s832_s0 + $0x30] sm:$0xff]  ;;  %v21_v17 = vld [vmem:[%s832_s0 + $0x38] sm:$0xff] }
   0x4   :  { %v18_v10 = vld [vmem:[%s832_s0 + $0x20] sm:$0xff]  ;;  %v90_v15 = vmul.f32 %v316_v1, %v19_v11  ;;  %v91_v16 = vmul.f32 %v316_v1, %v20_v12  ;;  %v23_v19 = vld [vmem:[%s832_s0 + $0x48] sm:$0xff]  ;;  %v92_v23 = vmul.f32 %v316_v1, %v21_v17  ;;  %v24_v24 = vld [vmem:[%s832_s0 + $0x50] sm:$0xff] }
   0x5   :  { %v156_v13 = vadd.f32 %v321_v2, %v85_v3  ;;  %v89_v14 = vmul.f32 %v316_v1, %v18_v10  ;;  %v22_v18 = vld [vmem:[%s832_s0 + $0x40] sm:$0xff]  ;;  %v157_v20 = vadd.f32 %v321_v2, %v86_v7  ;;  %v158_v21 = vadd.f32 %v321_v2, %v87_v8  ;;  %v25_v25 = vld [vmem:[%s832_s0 + $0x58] sm:$0xff] }
   0x6   :  { %v159_v22 = vadd.f32 %v321_v2, %v88_v9  ;;  %v26_v26 = vld [vmem:[%s832_s0 + $0x60] sm:$0xff]  ;;  %v161_v28 = vadd.f32 %v321_v2, %v90_v15  ;;  %v162_v29 = vadd.f32 %v321_v2, %v91_v16  ;;  %v93_v30 = vmul.f32 %v316_v1, %v22_v18 }
   0x7   :  { %220 = vst [vmem:[%s835_s3] sm:$0xff] %v156_v13  ;;  %v160_v27 = vadd.f32 %v321_v2, %v89_v14  ;;  %v163_v34 = vadd.f32 %v321_v2, %v92_v23  ;;  %v94_v35 = vmul.f32 %v316_v1, %v23_v19  ;;  %v95_v36 = vmul.f32 %v316_v1, %v24_v24 }
   0x8   :  { %v96_v37 = vmul.f32 %v316_v1, %v25_v25  ;;  %v164_v39 = vadd.f32 %v321_v2, %v93_v30  ;;  %v97_v40 = vmul.f32 %v316_v1, %v26_v26 }
   0x9   :  { %v165_v46 = vadd.f32 %v321_v2, %v94_v35  ;;  %v166_v47 = vadd.f32 %v321_v2, %v95_v36 }
   0xa   :  { %v167_v48 = vadd.f32 %v321_v2, %v96_v37  ;;  %v168_v53 = vadd.f32 %v321_v2, %v97_v40 }
   0xe   :  { %v27_v31 = vld [vmem:[%s832_s0 + $0x68] sm:$0xff]  ;;  %v28_v32 = vld [vmem:[%s832_s0 + $0x70] sm:$0xff]  ;;  %v29_v33 = vld [vmem:[%s832_s0 + $0x78] sm:$0xff] }
   0xf   :  { %221 = vst [vmem:[%s835_s3 + $0x8] sm:$0xff] %v157_v20  ;;  %222 = vst [vmem:[%s835_s3 + $0x10] sm:$0xff] %v158_v21  ;;  %v98_v41 = vmul.f32 %v316_v1, %v27_v31  ;;  %v99_v42 = vmul.f32 %v316_v1, %v28_v32  ;;  %v100_v49 = vmul.f32 %v316_v1, %v29_v33 }
  0x10   :  { %223 = vst [vmem:[%s835_s3 + $0x18] sm:$0xff] %v159_v22 }
  0x11   :  { %v169_v54 = vadd.f32 %v321_v2, %v98_v41  ;;  %v170_v55 = vadd.f32 %v321_v2, %v99_v42  ;;  %v171_v58 = vadd.f32 %v321_v2, %v100_v49 }
  0x17   :  { %v30_v38 = vld [vmem:[%s832_s0 + $0x80] sm:$0xff] }
  0x18   :  { %224 = vst [vmem:[%s835_s3 + $0x20] sm:$0xff] %v160_v27  ;;  %225 = vst [vmem:[%s835_s3 + $0x28] sm:$0xff] %v161_v28  ;;  %v101_v56 = vmul.f32 %v316_v1, %v30_v38 }
  0x19   :  { %226 = vst [vmem:[%s835_s3 + $0x30] sm:$0xff] %v162_v29 }
  0x1a   :  { %v172_v63 = vadd.f32 %v321_v2, %v101_v56 }
  0x20   :  { %v31_v43 = vld [vmem:[%s832_s0 + $0x88] sm:$0xff]  ;;  %v32_v44 = vld [vmem:[%s832_s0 + $0x90] sm:$0xff]  ;;  %v33_v45 = vld [vmem:[%s832_s0 + $0x98] sm:$0xff] }
  0x21   :  { %227 = vst [vmem:[%s835_s3 + $0x38] sm:$0xff] %v163_v34  ;;  %v102_v59 = vmul.f32 %v316_v1, %v31_v43  ;;  %v103_v60 = vmul.f32 %v316_v1, %v32_v44  ;;  %v104_v61 = vmul.f32 %v316_v1, %v33_v45 }
  0x23   :  { %v173_v8 = vadd.f32 %v321_v2, %v102_v59  ;;  %v174_v9 = vadd.f32 %v321_v2, %v103_v60  ;;  %v175_v10 = vadd.f32 %v321_v2, %v104_v61 }
  0x28   :  { %v34_v50 = vld [vmem:[%s832_s0 + $0xa0] sm:$0xff]  ;;  %v35_v51 = vld [vmem:[%s832_s0 + $0xa8] sm:$0xff]  ;;  %v36_v52 = vld [vmem:[%s832_s0 + $0xb0] sm:$0xff] }
  0x29   :  { %228 = vst [vmem:[%s835_s3 + $0x40] sm:$0xff] %v164_v39  ;;  %v105_v0 = vmul.f32 %v316_v1, %v34_v50  ;;  %v106_v3 = vmul.f32 %v316_v1, %v35_v51  ;;  %v107_v4 = vmul.f32 %v316_v1, %v36_v52 }
  0x2b   :  { %v176_v15 = vadd.f32 %v321_v2, %v105_v0  ;;  %v177_v16 = vadd.f32 %v321_v2, %v106_v3  ;;  %v178_v17 = vadd.f32 %v321_v2, %v107_v4 }
  0x30   :  { %v37_v57 = vld [vmem:[%s832_s0 + $0xb8] sm:$0xff] }
  0x31   :  { %229 = vst [vmem:[%s835_s3 + $0x48] sm:$0xff] %v165_v46  ;;  %230 = vst [vmem:[%s835_s3 + $0x50] sm:$0xff] %v166_v47  ;;  %v108_v11 = vmul.f32 %v316_v1, %v37_v57 }
  0x32   :  { %231 = vst [vmem:[%s835_s3 + $0x58] sm:$0xff] %v167_v48 }
  0x33   :  { %v179_v20 = vadd.f32 %v321_v2, %v108_v11 }
  0x39   :  { %v38_v62 = vld [vmem:[%s832_s0 + $0xc0] sm:$0xff] }
  0x3a   :  { %232 = vst [vmem:[%s835_s3 + $0x60] sm:$0xff] %v168_v53  ;;  %233 = vst [vmem:[%s835_s3 + $0x68] sm:$0xff] %v169_v54  ;;  %v109_v18 = vmul.f32 %v316_v1, %v38_v62 }
  0x3b   :  { %234 = vst [vmem:[%s835_s3 + $0x70] sm:$0xff] %v170_v55 }
  0x3c   :  { %v180_v25 = vadd.f32 %v321_v2, %v109_v18 }
  0x42   :  { %v39_v5 = vld [vmem:[%s832_s0 + $0xc8] sm:$0xff]  ;;  %v40_v6 = vld [vmem:[%s832_s0 + $0xd0] sm:$0xff]  ;;  %v41_v7 = vld [vmem:[%s832_s0 + $0xd8] sm:$0xff] }
  0x43   :  { %235 = vst [vmem:[%s835_s3 + $0x78] sm:$0xff] %v171_v58  ;;  %v110_v21 = vmul.f32 %v316_v1, %v39_v5  ;;  %v111_v22 = vmul.f32 %v316_v1, %v40_v6  ;;  %v112_v23 = vmul.f32 %v316_v1, %v41_v7 }
  0x45   :  { %v181_v32 = vadd.f32 %v321_v2, %v110_v21  ;;  %v182_v33 = vadd.f32 %v321_v2, %v111_v22  ;;  %v183_v34 = vadd.f32 %v321_v2, %v112_v23 }
  0x4a   :  { %v42_v12 = vld [vmem:[%s832_s0 + $0xe0] sm:$0xff]  ;;  %v43_v13 = vld [vmem:[%s832_s0 + $0xe8] sm:$0xff]  ;;  %v44_v14 = vld [vmem:[%s832_s0 + $0xf0] sm:$0xff] }
  0x4b   :  { %236 = vst [vmem:[%s835_s3 + $0x80] sm:$0xff] %v172_v63  ;;  %v113_v26 = vmul.f32 %v316_v1, %v42_v12  ;;  %v114_v27 = vmul.f32 %v316_v1, %v43_v13  ;;  %v115_v28 = vmul.f32 %v316_v1, %v44_v14 }
  0x4d   :  { %v184_v39 = vadd.f32 %v321_v2, %v113_v26  ;;  %v185_v40 = vadd.f32 %v321_v2, %v114_v27  ;;  %v186_v41 = vadd.f32 %v321_v2, %v115_v28 }
  0x52   :  { %v45_v19 = vld [vmem:[%s832_s0 + $0xf8] sm:$0xff] }
  0x53   :  { %237 = vst [vmem:[%s835_s3 + $0x88] sm:$0xff] %v173_v8  ;;  %238 = vst [vmem:[%s835_s3 + $0x90] sm:$0xff] %v174_v9  ;;  %v116_v35 = vmul.f32 %v316_v1, %v45_v19 }
  0x54   :  { %239 = vst [vmem:[%s835_s3 + $0x98] sm:$0xff] %v175_v10 }
  0x55   :  { %v187_v44 = vadd.f32 %v321_v2, %v116_v35 }
  0x5b   :  { %v46_v24 = vld [vmem:[%s832_s0 + $0x100] sm:$0xff] }
  0x5c   :  { %240 = vst [vmem:[%s835_s3 + $0xa0] sm:$0xff] %v176_v15  ;;  %241 = vst [vmem:[%s835_s3 + $0xa8] sm:$0xff] %v177_v16  ;;  %v117_v42 = vmul.f32 %v316_v1, %v46_v24 }
  0x5d   :  { %242 = vst [vmem:[%s835_s3 + $0xb0] sm:$0xff] %v178_v17 }
  0x5e   :  { %v188_v49 = vadd.f32 %v321_v2, %v117_v42 }
  0x64   :  { %v47_v29 = vld [vmem:[%s832_s0 + $0x108] sm:$0xff]  ;;  %v48_v30 = vld [vmem:[%s832_s0 + $0x110] sm:$0xff]  ;;  %v49_v31 = vld [vmem:[%s832_s0 + $0x118] sm:$0xff] }
  0x65   :  { %243 = vst [vmem:[%s835_s3 + $0xb8] sm:$0xff] %v179_v20  ;;  %v118_v45 = vmul.f32 %v316_v1, %v47_v29  ;;  %v119_v46 = vmul.f32 %v316_v1, %v48_v30  ;;  %v120_v47 = vmul.f32 %v316_v1, %v49_v31 }
  0x67   :  { %v189_v56 = vadd.f32 %v321_v2, %v118_v45  ;;  %v190_v57 = vadd.f32 %v321_v2, %v119_v46  ;;  %v191_v58 = vadd.f32 %v321_v2, %v120_v47 }
  0x6c   :  { %v50_v36 = vld [vmem:[%s832_s0 + $0x120] sm:$0xff]  ;;  %v51_v37 = vld [vmem:[%s832_s0 + $0x128] sm:$0xff]  ;;  %v52_v38 = vld [vmem:[%s832_s0 + $0x130] sm:$0xff] }
  0x6d   :  { %244 = vst [vmem:[%s835_s3 + $0xc0] sm:$0xff] %v180_v25  ;;  %v121_v50 = vmul.f32 %v316_v1, %v50_v36  ;;  %v122_v51 = vmul.f32 %v316_v1, %v51_v37  ;;  %v123_v52 = vmul.f32 %v316_v1, %v52_v38 }
  0x6f   :  { %v192_v63 = vadd.f32 %v321_v2, %v121_v50  ;;  %v193_v0 = vadd.f32 %v321_v2, %v122_v51  ;;  %v194_v3 = vadd.f32 %v321_v2, %v123_v52 }
  0x74   :  { %v53_v43 = vld [vmem:[%s832_s0 + $0x138] sm:$0xff] }
  0x75   :  { %245 = vst [vmem:[%s835_s3 + $0xc8] sm:$0xff] %v181_v32  ;;  %246 = vst [vmem:[%s835_s3 + $0xd0] sm:$0xff] %v182_v33  ;;  %v124_v59 = vmul.f32 %v316_v1, %v53_v43 }
  0x76   :  { %247 = vst [vmem:[%s835_s3 + $0xd8] sm:$0xff] %v183_v34 }
  0x77   :  { %v195_v6 = vadd.f32 %v321_v2, %v124_v59 }
  0x7d   :  { %v54_v48 = vld [vmem:[%s832_s0 + $0x140] sm:$0xff] }
  0x7e   :  { %248 = vst [vmem:[%s835_s3 + $0xe0] sm:$0xff] %v184_v39  ;;  %249 = vst [vmem:[%s835_s3 + $0xe8] sm:$0xff] %v185_v40  ;;  %v125_v4 = vmul.f32 %v316_v1, %v54_v48 }
  0x7f   :  { %250 = vst [vmem:[%s835_s3 + $0xf0] sm:$0xff] %v186_v41 }
  0x80   :  { %v196_v11 = vadd.f32 %v321_v2, %v125_v4 }
  0x86   :  { %v55_v53 = vld [vmem:[%s832_s0 + $0x148] sm:$0xff]  ;;  %v56_v54 = vld [vmem:[%s832_s0 + $0x150] sm:$0xff]  ;;  %v57_v55 = vld [vmem:[%s832_s0 + $0x158] sm:$0xff] }
  0x87   :  { %251 = vst [vmem:[%s835_s3 + $0xf8] sm:$0xff] %v187_v44  ;;  %v126_v7 = vmul.f32 %v316_v1, %v55_v53  ;;  %v127_v8 = vmul.f32 %v316_v1, %v56_v54  ;;  %v128_v9 = vmul.f32 %v316_v1, %v57_v55 }
  0x89   :  { %v197_v18 = vadd.f32 %v321_v2, %v126_v7  ;;  %v198_v19 = vadd.f32 %v321_v2, %v127_v8  ;;  %v199_v20 = vadd.f32 %v321_v2, %v128_v9 }
  0x8e   :  { %v58_v60 = vld [vmem:[%s832_s0 + $0x160] sm:$0xff]  ;;  %v59_v61 = vld [vmem:[%s832_s0 + $0x168] sm:$0xff]  ;;  %v60_v62 = vld [vmem:[%s832_s0 + $0x170] sm:$0xff] }
  0x8f   :  { %252 = vst [vmem:[%s835_s3 + $0x100] sm:$0xff] %v188_v49  ;;  %v129_v12 = vmul.f32 %v316_v1, %v58_v60  ;;  %v130_v13 = vmul.f32 %v316_v1, %v59_v61  ;;  %v131_v14 = vmul.f32 %v316_v1, %v60_v62 }
  0x91   :  { %v200_v25 = vadd.f32 %v321_v2, %v129_v12  ;;  %v201_v26 = vadd.f32 %v321_v2, %v130_v13  ;;  %v202_v27 = vadd.f32 %v321_v2, %v131_v14 }
  0x96   :  { %v61_v5 = vld [vmem:[%s832_s0 + $0x178] sm:$0xff] }
  0x97   :  { %253 = vst [vmem:[%s835_s3 + $0x108] sm:$0xff] %v189_v56  ;;  %254 = vst [vmem:[%s835_s3 + $0x110] sm:$0xff] %v190_v57  ;;  %v132_v21 = vmul.f32 %v316_v1, %v61_v5 }
  0x98   :  { %255 = vst [vmem:[%s835_s3 + $0x118] sm:$0xff] %v191_v58 }
  0x99   :  { %v203_v30 = vadd.f32 %v321_v2, %v132_v21 }
  0x9f   :  { %v62_v10 = vld [vmem:[%s832_s0 + $0x180] sm:$0xff] }
  0xa0   :  { %256 = vst [vmem:[%s835_s3 + $0x120] sm:$0xff] %v192_v63  ;;  %257 = vst [vmem:[%s835_s3 + $0x128] sm:$0xff] %v193_v0  ;;  %v133_v28 = vmul.f32 %v316_v1, %v62_v10 }
  0xa1   :  { %258 = vst [vmem:[%s835_s3 + $0x130] sm:$0xff] %v194_v3 }
  0xa2   :  { %v204_v35 = vadd.f32 %v321_v2, %v133_v28 }
  0xa8   :  { %v63_v15 = vld [vmem:[%s832_s0 + $0x188] sm:$0xff]  ;;  %v64_v16 = vld [vmem:[%s832_s0 + $0x190] sm:$0xff]  ;;  %v65_v17 = vld [vmem:[%s832_s0 + $0x198] sm:$0xff] }
  0xa9   :  { %259 = vst [vmem:[%s835_s3 + $0x138] sm:$0xff] %v195_v6  ;;  %v134_v31 = vmul.f32 %v316_v1, %v63_v15  ;;  %v135_v32 = vmul.f32 %v316_v1, %v64_v16  ;;  %v136_v33 = vmul.f32 %v316_v1, %v65_v17 }
  0xab   :  { %v205_v42 = vadd.f32 %v321_v2, %v134_v31  ;;  %v206_v43 = vadd.f32 %v321_v2, %v135_v32  ;;  %v207_v44 = vadd.f32 %v321_v2, %v136_v33 }
  0xb0   :  { %v66_v22 = vld [vmem:[%s832_s0 + $0x1a0] sm:$0xff]  ;;  %v67_v23 = vld [vmem:[%s832_s0 + $0x1a8] sm:$0xff]  ;;  %v68_v24 = vld [vmem:[%s832_s0 + $0x1b0] sm:$0xff] }
  0xb1   :  { %260 = vst [vmem:[%s835_s3 + $0x140] sm:$0xff] %v196_v11  ;;  %v137_v36 = vmul.f32 %v316_v1, %v66_v22  ;;  %v138_v37 = vmul.f32 %v316_v1, %v67_v23  ;;  %v139_v38 = vmul.f32 %v316_v1, %v68_v24 }
  0xb3   :  { %v208_v49 = vadd.f32 %v321_v2, %v137_v36  ;;  %v209_v50 = vadd.f32 %v321_v2, %v138_v37  ;;  %v210_v51 = vadd.f32 %v321_v2, %v139_v38 }
  0xb8   :  { %v69_v29 = vld [vmem:[%s832_s0 + $0x1b8] sm:$0xff] }
  0xb9   :  { %261 = vst [vmem:[%s835_s3 + $0x148] sm:$0xff] %v197_v18  ;;  %262 = vst [vmem:[%s835_s3 + $0x150] sm:$0xff] %v198_v19  ;;  %v140_v45 = vmul.f32 %v316_v1, %v69_v29 }
  0xba   :  { %263 = vst [vmem:[%s835_s3 + $0x158] sm:$0xff] %v199_v20 }
  0xbb   :  { %v211_v54 = vadd.f32 %v321_v2, %v140_v45 }
  0xc1   :  { %v70_v34 = vld [vmem:[%s832_s0 + $0x1c0] sm:$0xff] }
  0xc2   :  { %264 = vst [vmem:[%s835_s3 + $0x160] sm:$0xff] %v200_v25  ;;  %265 = vst [vmem:[%s835_s3 + $0x168] sm:$0xff] %v201_v26  ;;  %v141_v52 = vmul.f32 %v316_v1, %v70_v34 }
  0xc3   :  { %266 = vst [vmem:[%s835_s3 + $0x170] sm:$0xff] %v202_v27 }
  0xc4   :  { %v212_v58 = vadd.f32 %v321_v2, %v141_v52 }
  0xca   :  { %v71_v39 = vld [vmem:[%s832_s0 + $0x1c8] sm:$0xff]  ;;  %v72_v40 = vld [vmem:[%s832_s0 + $0x1d0] sm:$0xff]  ;;  %v73_v41 = vld [vmem:[%s832_s0 + $0x1d8] sm:$0xff] }
  0xcb   :  { %267 = vst [vmem:[%s835_s3 + $0x178] sm:$0xff] %v203_v30  ;;  %v142_v55 = vmul.f32 %v316_v1, %v71_v39  ;;  %v143_v56 = vmul.f32 %v316_v1, %v72_v40  ;;  %v144_v57 = vmul.f32 %v316_v1, %v73_v41 }
  0xcd   :  { %v213_v62 = vadd.f32 %v321_v2, %v142_v55  ;;  %v214_v63 = vadd.f32 %v321_v2, %v143_v56  ;;  %v215_v0 = vadd.f32 %v321_v2, %v144_v57 }
  0xd2   :  { %v74_v46 = vld [vmem:[%s832_s0 + $0x1e0] sm:$0xff]  ;;  %v75_v47 = vld [vmem:[%s832_s0 + $0x1e8] sm:$0xff]  ;;  %v76_v48 = vld [vmem:[%s832_s0 + $0x1f0] sm:$0xff] }
  0xd3   :  { %268 = vst [vmem:[%s835_s3 + $0x180] sm:$0xff] %v204_v35  ;;  %v145_v59 = vmul.f32 %v316_v1, %v74_v46  ;;  %v146_v60 = vmul.f32 %v316_v1, %v75_v47  ;;  %v147_v61 = vmul.f32 %v316_v1, %v76_v48 }
  0xd5   :  { %v216_v4 = vadd.f32 %v321_v2, %v145_v59  ;;  %v217_v5 = vadd.f32 %v321_v2, %v146_v60  ;;  %v218_v6 = vadd.f32 %v321_v2, %v147_v61 }
  0xda   :  { %v77_v53 = vld [vmem:[%s832_s0 + $0x1f8] sm:$0xff] }
  0xdb   :  { %269 = vst [vmem:[%s835_s3 + $0x188] sm:$0xff] %v205_v42  ;;  %270 = vst [vmem:[%s835_s3 + $0x190] sm:$0xff] %v206_v43  ;;  %v148_v3 = vmul.f32 %v316_v1, %v77_v53 }
  0xdc   :  { %271 = vst [vmem:[%s835_s3 + $0x198] sm:$0xff] %v207_v44  ;;  %272 = vst [vmem:[%s835_s3 + $0x1a0] sm:$0xff] %v208_v49 }
  0xdd   :  { %273 = vst [vmem:[%s835_s3 + $0x1a8] sm:$0xff] %v209_v50  ;;  %274 = vst [vmem:[%s835_s3 + $0x1b0] sm:$0xff] %v210_v51  ;;  %v219_v1 = vadd.f32 %v321_v2, %v148_v3 }
  0xde   :  { %275 = vst [vmem:[%s835_s3 + $0x1b8] sm:$0xff] %v211_v54  ;;  %276 = vst [vmem:[%s835_s3 + $0x1c0] sm:$0xff] %v212_v58 }
  0xdf   :  { %277 = vst [vmem:[%s835_s3 + $0x1c8] sm:$0xff] %v213_v62  ;;  %278 = vst [vmem:[%s835_s3 + $0x1d0] sm:$0xff] %v214_v63 }
  0xe0   :  { %279 = vst [vmem:[%s835_s3 + $0x1d8] sm:$0xff] %v215_v0  ;;  %280 = vst [vmem:[%s835_s3 + $0x1e0] sm:$0xff] %v216_v4 }
  0xe1   :  { %281 = vst [vmem:[%s835_s3 + $0x1e8] sm:$0xff] %v217_v5  ;;  %282 = vst [vmem:[%s835_s3 + $0x1f0] sm:$0xff] %v218_v6 }
  0xe2   :  { %283 = vst [vmem:[%s835_s3 + $0x1f8] sm:$0xff] %v219_v1 }

// kernel: downsampling_forward.4
= control target key start
LH: loop header
LB: loop body
LE: loop exit
PB: predicated region body
PF: predicated region fallthrough
CT: control target
= control target key end

     0   :  { %vm179_vm0 = vcmask 1041408   ;;  %vm82_vm1 = vcmask 293888   ;;  %vm738_vm2 = vcmask 1040384   ;;  %s1396_s1 = inlined_call_operand.vmem [shape: bf16[36,128], index: 1, kind: input, shape index: {}]   ;;  %s1397_s0 = inlined_call_operand.vmem [shape: s8[512,36], index: 0, kind: input, shape index: {}]   ;;  %s1398_s2 = inlined_call_operand.vmem [shape: f32[512,128], index: 2, kind: output, shape index: {0}]   ;;  %s1399_s3 = inlined_call_operand.vmem [shape: f32[1,2,128], index: 3, kind: output, shape index: {1}]  }
   0x1   :  { %v897_v0 = vld [vmem:[%s1396_s1 + $0x10] ss:$0 sps:$4 sm:$0x33]   ;;  %v898_v1 = vld [vmem:[%s1396_s1 + $0x8] sm:$0xff]   ;;  %v14_v3 = vld [vmem:[%s1397_s0] sm:$0xff] }
   0x2   :  { %895 = vmatprep.subr.msk.bf16.mxu0 %vm179_vm0, %v897_v0  ;;  %v181_v2 = vsel %vm179_vm0, %v897_v0, 0  ;;  %896 = vmatprep.subr.msk.bf16.mxu1 %vm179_vm0, %v897_v0  ;;  %v30_v4 = vunpack.c.l.s8.bf16 %v14_v3  ;;  %v899_v5 = vld [vmem:[%s1396_s1] sm:$0xff]   ;;  %v15_v8 = vld [vmem:[%s1397_s0 + $0x8] sm:$0xff]  ;;  %v31_v10 = vunpack.c.h.s8.bf16 %v14_v3  ;;  %v16_v14 = vld [vmem:[%s1397_s0 + $0x10] sm:$0xff] }
   0x3   :  { %820 = vmatpush3.bf16.msra.mxu0 %v181_v2  ;;  %892 = vmatpush3.bf16.msra.mxu1 %v181_v2  ;;  %v22_v6 = vld [vmem:[%s1397_s0 + $0x40] sm:$0xff]  ;;  %v23_v9 = vld [vmem:[%s1397_s0 + $0x48] sm:$0xff]  ;;  %v32_v12 = vunpack.c.l.s8.bf16 %v15_v8  ;;  %v24_v15 = vld [vmem:[%s1397_s0 + $0x50] sm:$0xff]  ;;  %v33_v16 = vunpack.c.h.s8.bf16 %v15_v8  ;;  %v34_v18 = vunpack.c.l.s8.bf16 %v16_v14  ;;  %v35_v22 = vunpack.c.h.s8.bf16 %v16_v14 }
   0x4   :  { %821 = vmatprep.subr.bf16.mxu0 %v898_v1  ;;  %890 = vmatprep.subr.bf16.mxu1 %v898_v1  ;;  %v46_v7 = vunpack.c.l.s8.bf16 %v22_v6  ;;  %v47_v11 = vunpack.c.h.s8.bf16 %v22_v6  ;;  %v48_v13 = vunpack.c.l.s8.bf16 %v23_v9  ;;  %v49_v17 = vunpack.c.h.s8.bf16 %v23_v9  ;;  %v17_v20 = vld [vmem:[%s1397_s0 + $0x18] sm:$0xff]  ;;  %v18_v26 = vld [vmem:[%s1397_s0 + $0x20] sm:$0xff]  ;;  %v19_v32 = vld [vmem:[%s1397_s0 + $0x28] sm:$0xff] }
   0x5   :  { %825 = vmatprep.mubr.msk.bf16.mxu0 %vm82_vm1, %v30_v4  ;;  %v50_v19 = vunpack.c.l.s8.bf16 %v24_v15  ;;  %v25_v21 = vld [vmem:[%s1397_s0 + $0x58] sm:$0xff]  ;;  %v51_v23 = vunpack.c.h.s8.bf16 %v24_v15  ;;  %v36_v24 = vunpack.c.l.s8.bf16 %v17_v20  ;;  %v26_v27 = vld [vmem:[%s1397_s0 + $0x60] sm:$0xff]  ;;  %v37_v28 = vunpack.c.h.s8.bf16 %v17_v20  ;;  %v27_v33 = vld [vmem:[%s1397_s0 + $0x68] sm:$0xff] }
   0x6   :  { %857 = vmatprep.mubr.msk.bf16.mxu1 %vm82_vm1, %v46_v7  ;;  %v52_v25 = vunpack.c.l.s8.bf16 %v25_v21  ;;  %v53_v29 = vunpack.c.h.s8.bf16 %v25_v21  ;;  %v38_v30 = vunpack.c.l.s8.bf16 %v18_v26  ;;  %v54_v31 = vunpack.c.l.s8.bf16 %v26_v27  ;;  %v20_v38 = vld [vmem:[%s1397_s0 + $0x30] sm:$0xff]  ;;  %v21_v44 = vld [vmem:[%s1397_s0 + $0x38] sm:$0xff] }
   0x7   :  { %822 = vmatpush3.bf16.msra.mxu0 %v898_v1  ;;  %893 = vmatpush3.bf16.msra.mxu1 %v898_v1  ;;  %v39_v34 = vunpack.c.h.s8.bf16 %v18_v26  ;;  %v55_v35 = vunpack.c.h.s8.bf16 %v26_v27  ;;  %v40_v36 = vunpack.c.l.s8.bf16 %v19_v32  ;;  %v56_v37 = vunpack.c.l.s8.bf16 %v27_v33  ;;  %v28_v39 = vld [vmem:[%s1397_s0 + $0x70] sm:$0xff]  ;;  %v29_v45 = vld [vmem:[%s1397_s0 + $0x78] sm:$0xff] }
   0x8   :  { %823 = vmatprep.subr.bf16.mxu0 %v899_v5  ;;  %891 = vmatprep.subr.bf16.mxu1 %v899_v5  ;;  %v41_v40 = vunpack.c.h.s8.bf16 %v19_v32  ;;  %v57_v41 = vunpack.c.h.s8.bf16 %v27_v33  ;;  %v42_v42 = vunpack.c.l.s8.bf16 %v20_v38  ;;  %v58_v43 = vunpack.c.l.s8.bf16 %v28_v39 }
   0x9   :  { %v43_v46 = vunpack.c.h.s8.bf16 %v20_v38  ;;  %v59_v47 = vunpack.c.h.s8.bf16 %v28_v39  ;;  %v44_v48 = vunpack.c.l.s8.bf16 %v21_v44  ;;  %v60_v49 = vunpack.c.l.s8.bf16 %v29_v45 }
   0xa   :  { %v45_v50 = vunpack.c.h.s8.bf16 %v21_v44  ;;  %v61_v51 = vunpack.c.h.s8.bf16 %v29_v45 }
   0xb   :  { %824 = vmatpush3.bf16.msra.mxu0 %v899_v5  ;;  %894 = vmatpush3.bf16.msra.mxu1 %v899_v5 }
   0xe   :  { %826 = vmatmul.mubr.msk.bf16.vlgmr.msra.gmra.mxu0 %vm82_vm1, %v31_v10  ;;  %858 = vmatmul.mubr.msk.bf16.vlgmr.msra.gmra.mxu1 %vm82_vm1, %v47_v11 }
   0xf   :  { %829 = vmatprep.mubr.msk.bf16.mxu0 %vm82_vm1, %v32_v12  ;;  %861 = vmatprep.mubr.msk.bf16.mxu1 %vm82_vm1, %v48_v13 }
  0x16   :  { %830 = vmatmul.mubr.msk.bf16.gmra.mxu0 %vm82_vm1, %v33_v16  ;;  %862 = vmatmul.mubr.msk.bf16.gmra.mxu1 %vm82_vm1, %v49_v17 }
  0x17   :  { %833 = vmatprep.mubr.msk.bf16.mxu0 %vm82_vm1, %v34_v18  ;;  %865 = vmatprep.mubr.msk.bf16.mxu1 %vm82_vm1, %v50_v19 }
  0x1e   :  { %834 = vmatmul.mubr.msk.bf16.gmra.mxu0 %vm82_vm1, %v35_v22  ;;  %866 = vmatmul.mubr.msk.bf16.gmra.mxu1 %vm82_vm1, %v51_v23 }
  0x1f   :  { %837 = vmatprep.mubr.msk.bf16.mxu0 %vm82_vm1, %v36_v24  ;;  %869 = vmatprep.mubr.msk.bf16.mxu1 %vm82_vm1, %v52_v25 }
  0x26   :  { %838 = vmatmul.mubr.msk.bf16.gmra.mxu0 %vm82_vm1, %v37_v28  ;;  %870 = vmatmul.mubr.msk.bf16.gmra.mxu1 %vm82_vm1, %v53_v29 }
  0x27   :  { %841 = vmatprep.mubr.msk.bf16.mxu0 %vm82_vm1, %v38_v30  ;;  %873 = vmatprep.mubr.msk.bf16.mxu1 %vm82_vm1, %v54_v31 }
  0x2e   :  { %842 = vmatmul.mubr.msk.bf16.gmra.mxu0 %vm82_vm1, %v39_v34  ;;  %874 = vmatmul.mubr.msk.bf16.gmra.mxu1 %vm82_vm1, %v55_v35 }
  0x2f   :  { %845 = vmatprep.mubr.msk.bf16.mxu0 %vm82_vm1, %v40_v36  ;;  %877 = vmatprep.mubr.msk.bf16.mxu1 %vm82_vm1, %v56_v37 }
  0x36   :  { %846 = vmatmul.mubr.msk.bf16.gmra.mxu0 %vm82_vm1, %v41_v40  ;;  %878 = vmatmul.mubr.msk.bf16.gmra.mxu1 %vm82_vm1, %v57_v41 }
  0x37   :  { %849 = vmatprep.mubr.msk.bf16.mxu0 %vm82_vm1, %v42_v42  ;;  %881 = vmatprep.mubr.msk.bf16.mxu1 %vm82_vm1, %v58_v43 }
  0x3e   :  { %850 = vmatmul.mubr.msk.bf16.gmra.mxu0 %vm82_vm1, %v43_v46  ;;  %882 = vmatmul.mubr.msk.bf16.gmra.mxu1 %vm82_vm1, %v59_v47 }
  0x3f   :  { %853 = vmatprep.mubr.msk.bf16.mxu0 %vm82_vm1, %v44_v48  ;;  %885 = vmatprep.mubr.msk.bf16.mxu1 %vm82_vm1, %v60_v49 }
  0x46   :  { %854 = vmatmul.mubr.msk.bf16.gmra.mxu0 %vm82_vm1, %v45_v50  ;;  %886 = vmatmul.mubr.msk.bf16.gmra.mxu1 %vm82_vm1, %v61_v51 }
  0xce   :  { %v827_v52 = vpop.f32.mrf.mxu0  ;;  %v1009_v53 = vpop.f32.mrf.mxu1 }
  0xcf   :  { %474 = vst [vmem:[%s1398_s2 + $0x10] sm:$0xff] %v827_v52  ;;  %506 = vst [vmem:[%s1398_s2 + $0x110] sm:$0xff] %v1009_v53  ;;  %v607_v1 = vmul.f32 %v827_v52, %v827_v52 }
  0xd0   :  { %v217_v54 = vpop.f32.mrf.mxu0  ;;  %v1018_v55 = vpop.f32.mrf.mxu1 }
  0xd1   :  { %472 = vst [vmem:[%s1398_s2] sm:$0xff] %v217_v54  ;;  %504 = vst [vmem:[%s1398_s2 + $0x100] sm:$0xff] %v1018_v55  ;;  %v605_v60 = vmul.f32 %v217_v54, %v217_v54 }
  0xd2   :  { %v828_v56 = vpop.f32.mrf.mxu0  ;;  %v1027_v57 = vpop.f32.mrf.mxu1 }
  0xd3   :  { %475 = vst [vmem:[%s1398_s2 + $0x18] sm:$0xff] %v828_v56  ;;  %507 = vst [vmem:[%s1398_s2 + $0x118] sm:$0xff] %v1027_v57  ;;  %v608_v6 = vmul.f32 %v828_v56, %v828_v56 }
  0xd4   :  { %v220_v58 = vpop.f32.mrf.mxu0  ;;  %v1036_v59 = vpop.f32.mrf.mxu1 }
  0xd5   :  { %473 = vst [vmem:[%s1398_s2 + $0x8] sm:$0xff] %v220_v58  ;;  %v536_v61 = vadd.f32 %v220_v58, %v217_v54  ;;  %v606_v62 = vmul.f32 %v220_v58, %v220_v58  ;;  %505 = vst [vmem:[%s1398_s2 + $0x108] sm:$0xff] %v1036_v59 }
  0xd6   :  { %v831_v63 = vpop.f32.mrf.mxu0  ;;  %v1045_v0 = vpop.f32.mrf.mxu1 }
  0xd7   :  { %v537_v2 = vadd.f32 %v827_v52, %v536_v61  ;;  %v669_v3 = vadd.f32 %v606_v62, %v605_v60  ;;  %478 = vst [vmem:[%s1398_s2 + $0x30] sm:$0xff] %v831_v63  ;;  %510 = vst [vmem:[%s1398_s2 + $0x130] sm:$0xff] %v1045_v0  ;;  %v611_v21 = vmul.f32 %v831_v63, %v831_v63 }
  0xd8   :  { %v233_v4 = vpop.f32.mrf.mxu0  ;;  %v1054_v5 = vpop.f32.mrf.mxu1 }
  0xd9   :  { %v670_v7 = vadd.f32 %v669_v3, %v607_v1  ;;  %476 = vst [vmem:[%s1398_s2 + $0x20] sm:$0xff] %v233_v4  ;;  %v538_v8 = vadd.f32 %v828_v56, %v537_v2  ;;  %508 = vst [vmem:[%s1398_s2 + $0x120] sm:$0xff] %v1054_v5  ;;  %v609_v12 = vmul.f32 %v233_v4, %v233_v4 }
  0xda   :  { %v832_v9 = vpop.f32.mrf.mxu0  ;;  %v1063_v10 = vpop.f32.mrf.mxu1 }
  0xdb   :  { %v539_v11 = vadd.f32 %v538_v8, %v233_v4  ;;  %v671_v13 = vadd.f32 %v670_v7, %v608_v6  ;;  %479 = vst [vmem:[%s1398_s2 + $0x38] sm:$0xff] %v832_v9  ;;  %511 = vst [vmem:[%s1398_s2 + $0x138] sm:$0xff] %v1063_v10  ;;  %v612_v26 = vmul.f32 %v832_v9, %v832_v9 }
  0xdc   :  { %v236_v14 = vpop.f32.mrf.mxu0  ;;  %v1072_v15 = vpop.f32.mrf.mxu1 }
  0xdd   :  { %v672_v16 = vadd.f32 %v671_v13, %v609_v12  ;;  %477 = vst [vmem:[%s1398_s2 + $0x28] sm:$0xff] %v236_v14  ;;  %v540_v17 = vadd.f32 %v539_v11, %v236_v14  ;;  %v610_v18 = vmul.f32 %v236_v14, %v236_v14  ;;  %509 = vst [vmem:[%s1398_s2 + $0x128] sm:$0xff] %v1072_v15 }
  0xde   :  { %v835_v19 = vpop.f32.mrf.mxu0  ;;  %v1081_v20 = vpop.f32.mrf.mxu1 }
  0xdf   :  { %v541_v22 = vadd.f32 %v831_v63, %v540_v17  ;;  %v673_v23 = vadd.f32 %v672_v16, %v610_v18  ;;  %482 = vst [vmem:[%s1398_s2 + $0x50] sm:$0xff] %v835_v19  ;;  %514 = vst [vmem:[%s1398_s2 + $0x150] sm:$0xff] %v1081_v20  ;;  %v615_v41 = vmul.f32 %v835_v19, %v835_v19 }
  0xe0   :  { %v249_v24 = vpop.f32.mrf.mxu0  ;;  %v1090_v25 = vpop.f32.mrf.mxu1 }
  0xe1   :  { %v674_v27 = vadd.f32 %v673_v23, %v611_v21  ;;  %480 = vst [vmem:[%s1398_s2 + $0x40] sm:$0xff] %v249_v24  ;;  %v542_v28 = vadd.f32 %v832_v9, %v541_v22  ;;  %512 = vst [vmem:[%s1398_s2 + $0x140] sm:$0xff] %v1090_v25  ;;  %v613_v32 = vmul.f32 %v249_v24, %v249_v24 }
  0xe2   :  { %v836_v29 = vpop.f32.mrf.mxu0  ;;  %v1099_v30 = vpop.f32.mrf.mxu1 }
  0xe3   :  { %v543_v31 = vadd.f32 %v542_v28, %v249_v24  ;;  %v675_v33 = vadd.f32 %v674_v27, %v612_v26  ;;  %483 = vst [vmem:[%s1398_s2 + $0x58] sm:$0xff] %v836_v29  ;;  %515 = vst [vmem:[%s1398_s2 + $0x158] sm:$0xff] %v1099_v30  ;;  %v616_v46 = vmul.f32 %v836_v29, %v836_v29 }
  0xe4   :  { %v252_v34 = vpop.f32.mrf.mxu0  ;;  %v1108_v35 = vpop.f32.mrf.mxu1 }
  0xe5   :  { %v676_v36 = vadd.f32 %v675_v33, %v613_v32  ;;  %481 = vst [vmem:[%s1398_s2 + $0x48] sm:$0xff] %v252_v34  ;;  %v544_v37 = vadd.f32 %v543_v31, %v252_v34  ;;  %v614_v38 = vmul.f32 %v252_v34, %v252_v34  ;;  %513 = vst [vmem:[%s1398_s2 + $0x148] sm:$0xff] %v1108_v35 }
  0xe6   :  { %v839_v39 = vpop.f32.mrf.mxu0  ;;  %v1117_v40 = vpop.f32.mrf.mxu1 }
  0xe7   :  { %v545_v42 = vadd.f32 %v835_v19, %v544_v37  ;;  %v677_v43 = vadd.f32 %v676_v36, %v614_v38  ;;  %486 = vst [vmem:[%s1398_s2 + $0x70] sm:$0xff] %v839_v39  ;;  %518 = vst [vmem:[%s1398_s2 + $0x170] sm:$0xff] %v1117_v40  ;;  %v619_v2 = vmul.f32 %v839_v39, %v839_v39 }
  0xe8   :  { %v265_v44 = vpop.f32.mrf.mxu0  ;;  %v1126_v45 = vpop.f32.mrf.mxu1 }
  0xe9   :  { %v678_v47 = vadd.f32 %v677_v43, %v615_v41  ;;  %484 = vst [vmem:[%s1398_s2 + $0x60] sm:$0xff] %v265_v44  ;;  %v546_v48 = vadd.f32 %v836_v29, %v545_v42  ;;  %516 = vst [vmem:[%s1398_s2 + $0x160] sm:$0xff] %v1126_v45  ;;  %v617_v52 = vmul.f32 %v265_v44, %v265_v44 }
  0xea   :  { %v840_v49 = vpop.f32.mrf.mxu0  ;;  %v1135_v50 = vpop.f32.mrf.mxu1 }
  0xeb   :  { %v547_v51 = vadd.f32 %v546_v48, %v265_v44  ;;  %v679_v54 = vadd.f32 %v678_v47, %v616_v46  ;;  %487 = vst [vmem:[%s1398_s2 + $0x78] sm:$0xff] %v840_v49  ;;  %519 = vst [vmem:[%s1398_s2 + $0x178] sm:$0xff] %v1135_v50  ;;  %v620_v8 = vmul.f32 %v840_v49, %v840_v49 }
  0xec   :  { %v268_v56 = vpop.f32.mrf.mxu0  ;;  %v1144_v58 = vpop.f32.mrf.mxu1 }
  0xed   :  { %v680_v60 = vadd.f32 %v679_v54, %v617_v52  ;;  %485 = vst [vmem:[%s1398_s2 + $0x68] sm:$0xff] %v268_v56  ;;  %v548_v61 = vadd.f32 %v547_v51, %v268_v56  ;;  %v618_v62 = vmul.f32 %v268_v56, %v268_v56  ;;  %517 = vst [vmem:[%s1398_s2 + $0x168] sm:$0xff] %v1144_v58 }
  0xee   :  { %v843_v63 = vpop.f32.mrf.mxu0  ;;  %v1153_v1 = vpop.f32.mrf.mxu1 }
  0xef   :  { %v549_v3 = vadd.f32 %v839_v39, %v548_v61  ;;  %v681_v4 = vadd.f32 %v680_v60, %v618_v62  ;;  %490 = vst [vmem:[%s1398_s2 + $0x90] sm:$0xff] %v843_v63  ;;  %522 = vst [vmem:[%s1398_s2 + $0x190] sm:$0xff] %v1153_v1  ;;  %v623_v27 = vmul.f32 %v843_v63, %v843_v63 }
  0xf0   :  { %v281_v6 = vpop.f32.mrf.mxu0  ;;  %v1162_v7 = vpop.f32.mrf.mxu1 }
  0xf1   :  { %v682_v9 = vadd.f32 %v681_v4, %v619_v2  ;;  %488 = vst [vmem:[%s1398_s2 + $0x80] sm:$0xff] %v281_v6  ;;  %v550_v11 = vadd.f32 %v840_v49, %v549_v3  ;;  %520 = vst [vmem:[%s1398_s2 + $0x180] sm:$0xff] %v1162_v7  ;;  %v621_v16 = vmul.f32 %v281_v6, %v281_v6 }
  0xf2   :  { %v844_v12 = vpop.f32.mrf.mxu0  ;;  %v1171_v13 = vpop.f32.mrf.mxu1 }
  0xf3   :  { %v551_v14 = vadd.f32 %v550_v11, %v281_v6  ;;  %v683_v17 = vadd.f32 %v682_v9, %v620_v8  ;;  %491 = vst [vmem:[%s1398_s2 + $0x98] sm:$0xff] %v844_v12  ;;  %523 = vst [vmem:[%s1398_s2 + $0x198] sm:$0xff] %v1171_v13  ;;  %v624_v33 = vmul.f32 %v844_v12, %v844_v12 }
  0xf4   :  { %v284_v18 = vpop.f32.mrf.mxu0  ;;  %v1180_v19 = vpop.f32.mrf.mxu1 }
  0xf5   :  { %v684_v21 = vadd.f32 %v683_v17, %v621_v16  ;;  %489 = vst [vmem:[%s1398_s2 + $0x88] sm:$0xff] %v284_v18  ;;  %v552_v22 = vadd.f32 %v551_v14, %v284_v18  ;;  %v622_v23 = vmul.f32 %v284_v18, %v284_v18  ;;  %521 = vst [vmem:[%s1398_s2 + $0x188] sm:$0xff] %v1180_v19 }
  0xf6   :  { %v847_v24 = vpop.f32.mrf.mxu0  ;;  %v1189_v26 = vpop.f32.mrf.mxu1 }
  0xf7   :  { %v553_v28 = vadd.f32 %v843_v63, %v552_v22  ;;  %v685_v29 = vadd.f32 %v684_v21, %v622_v23  ;;  %494 = vst [vmem:[%s1398_s2 + $0xb0] sm:$0xff] %v847_v24  ;;  %526 = vst [vmem:[%s1398_s2 + $0x1b0] sm:$0xff] %v1189_v26  ;;  %v627_v52 = vmul.f32 %v847_v24, %v847_v24 }
  0xf8   :  { %v297_v31 = vpop.f32.mrf.mxu0  ;;  %v1198_v32 = vpop.f32.mrf.mxu1 }
  0xf9   :  { %v686_v34 = vadd.f32 %v685_v29, %v623_v27  ;;  %492 = vst [vmem:[%s1398_s2 + $0xa0] sm:$0xff] %v297_v31  ;;  %v554_v36 = vadd.f32 %v844_v12, %v553_v28  ;;  %524 = vst [vmem:[%s1398_s2 + $0x1a0] sm:$0xff] %v1198_v32  ;;  %v625_v41 = vmul.f32 %v297_v31, %v297_v31 }
  0xfa   :  { %v848_v37 = vpop.f32.mrf.mxu0  ;;  %v1207_v38 = vpop.f32.mrf.mxu1 }
  0xfb   :  { %v555_v39 = vadd.f32 %v554_v36, %v297_v31  ;;  %v687_v42 = vadd.f32 %v686_v34, %v624_v33  ;;  %495 = vst [vmem:[%s1398_s2 + $0xb8] sm:$0xff] %v848_v37  ;;  %527 = vst [vmem:[%s1398_s2 + $0x1b8] sm:$0xff] %v1207_v38  ;;  %v628_v62 = vmul.f32 %v848_v37, %v848_v37 }
  0xfc   :  { %v300_v43 = vpop.f32.mrf.mxu0  ;;  %v1216_v44 = vpop.f32.mrf.mxu1 }
  0xfd   :  { %v688_v46 = vadd.f32 %v687_v42, %v625_v41  ;;  %493 = vst [vmem:[%s1398_s2 + $0xa8] sm:$0xff] %v300_v43  ;;  %v556_v47 = vadd.f32 %v555_v39, %v300_v43  ;;  %v626_v48 = vmul.f32 %v300_v43, %v300_v43  ;;  %525 = vst [vmem:[%s1398_s2 + $0x1a8] sm:$0xff] %v1216_v44 }
  0xfe   :  { %v851_v49 = vpop.f32.mrf.mxu0  ;;  %v1225_v51 = vpop.f32.mrf.mxu1 }
  0xff   :  { %v557_v54 = vadd.f32 %v847_v24, %v556_v47  ;;  %v689_v56 = vadd.f32 %v688_v46, %v626_v48  ;;  %498 = vst [vmem:[%s1398_s2 + $0xd0] sm:$0xff] %v851_v49  ;;  %530 = vst [vmem:[%s1398_s2 + $0x1d0] sm:$0xff] %v1225_v51  ;;  %v631_v22 = vmul.f32 %v851_v49, %v851_v49 }
 0x100   :  { %v313_v60 = vpop.f32.mrf.mxu0  ;;  %v1234_v61 = vpop.f32.mrf.mxu1 }
 0x101   :  { %v690_v63 = vadd.f32 %v689_v56, %v627_v52  ;;  %496 = vst [vmem:[%s1398_s2 + $0xc0] sm:$0xff] %v313_v60  ;;  %v558_v2 = vadd.f32 %v848_v37, %v557_v54  ;;  %528 = vst [vmem:[%s1398_s2 + $0x1c0] sm:$0xff] %v1234_v61  ;;  %v629_v8 = vmul.f32 %v313_v60, %v313_v60 }
 0x102   :  { %v852_v3 = vpop.f32.mrf.mxu0  ;;  %v1243_v4 = vpop.f32.mrf.mxu1 }
 0x103   :  { %v559_v6 = vadd.f32 %v558_v2, %v313_v60  ;;  %v691_v9 = vadd.f32 %v690_v63, %v628_v62  ;;  %499 = vst [vmem:[%s1398_s2 + $0xd8] sm:$0xff] %v852_v3  ;;  %531 = vst [vmem:[%s1398_s2 + $0x1d8] sm:$0xff] %v1243_v4  ;;  %v632_v29 = vmul.f32 %v852_v3, %v852_v3 }
 0x104   :  { %v316_v11 = vpop.f32.mrf.mxu0  ;;  %v1252_v12 = vpop.f32.mrf.mxu1  ;;  %v637_v63 = vmul.f32 %v1018_v55, %v1018_v55 }
 0x105   :  { %v692_v14 = vadd.f32 %v691_v9, %v629_v8  ;;  %497 = vst [vmem:[%s1398_s2 + $0xc8] sm:$0xff] %v316_v11  ;;  %v560_v16 = vadd.f32 %v559_v6, %v316_v11  ;;  %v630_v17 = vmul.f32 %v316_v11, %v316_v11  ;;  %529 = vst [vmem:[%s1398_s2 + $0x1c8] sm:$0xff] %v1252_v12 }
 0x106   :  { %v855_v18 = vpop.f32.mrf.mxu0  ;;  %v1261_v21 = vpop.f32.mrf.mxu1  ;;  %v638_v8 = vmul.f32 %v1036_v59, %v1036_v59  ;;  %v639_v11 = vmul.f32 %v1009_v53, %v1009_v53 }
 0x107   :  { %v561_v23 = vadd.f32 %v851_v49, %v560_v16  ;;  %v693_v24 = vadd.f32 %v692_v14, %v630_v17  ;;  %502 = vst [vmem:[%s1398_s2 + $0xf0] sm:$0xff] %v855_v18  ;;  %534 = vst [vmem:[%s1398_s2 + $0x1f0] sm:$0xff] %v1261_v21  ;;  %v635_v49 = vmul.f32 %v855_v18, %v855_v18 }
 0x108   :  { %v329_v27 = vpop.f32.mrf.mxu0  ;;  %v1270_v28 = vpop.f32.mrf.mxu1  ;;  %v640_v17 = vmul.f32 %v1027_v57, %v1027_v57 }
 0x109   :  { %v694_v31 = vadd.f32 %v693_v24, %v631_v22  ;;  %500 = vst [vmem:[%s1398_s2 + $0xe0] sm:$0xff] %v329_v27  ;;  %v562_v33 = vadd.f32 %v852_v3, %v561_v23  ;;  %532 = vst [vmem:[%s1398_s2 + $0x1e0] sm:$0xff] %v1270_v28  ;;  %v633_v39 = vmul.f32 %v329_v27, %v329_v27 }
 0x10a   :  { %v856_v34 = vpop.f32.mrf.mxu0  ;;  %v1279_v36 = vpop.f32.mrf.mxu1  ;;  %v641_v23 = vmul.f32 %v1054_v5, %v1054_v5 }
 0x10b   :  { %v563_v37 = vadd.f32 %v562_v33, %v329_v27  ;;  %v695_v41 = vadd.f32 %v694_v31, %v632_v29  ;;  %503 = vst [vmem:[%s1398_s2 + $0xf8] sm:$0xff] %v856_v34  ;;  %535 = vst [vmem:[%s1398_s2 + $0x1f8] sm:$0xff] %v1279_v36  ;;  %v636_v56 = vmul.f32 %v856_v34, %v856_v34 }
 0x10c   :  { %v332_v42 = vpop.f32.mrf.mxu0  ;;  %v1288_v43 = vpop.f32.mrf.mxu1  ;;  %v642_v29 = vmul.f32 %v1072_v15, %v1072_v15 }
 0x10d   :  { %v696_v46 = vadd.f32 %v695_v41, %v633_v39  ;;  %501 = vst [vmem:[%s1398_s2 + $0xe8] sm:$0xff] %v332_v42  ;;  %v564_v47 = vadd.f32 %v563_v37, %v332_v42  ;;  %v634_v48 = vmul.f32 %v332_v42, %v332_v42  ;;  %533 = vst [vmem:[%s1398_s2 + $0x1e8] sm:$0xff] %v1288_v43 }
 0x10e   :  { %v645_v39 = vmul.f32 %v1090_v25, %v1090_v25 }
 0x10f   :  { %v565_v52 = vadd.f32 %v855_v18, %v564_v47  ;;  %v697_v54 = vadd.f32 %v696_v46, %v634_v48  ;;  %v646_v46 = vmul.f32 %v1108_v35, %v1108_v35 }
 0x111   :  { %v566_v60 = vadd.f32 %v856_v34, %v565_v52  ;;  %v698_v62 = vadd.f32 %v697_v54, %v635_v49  ;;  %v649_v54 = vmul.f32 %v1126_v45, %v1126_v45 }
 0x113   :  { %v699_v2 = vadd.f32 %v698_v62, %v636_v56  ;;  %v567_v3 = vadd.f32 %v566_v60, %v1018_v55  ;;  %v650_v62 = vmul.f32 %v1144_v58, %v1144_v58 }
 0x115   :  { %v568_v6 = vadd.f32 %v567_v3, %v1036_v59  ;;  %v700_v9 = vadd.f32 %v699_v2, %v637_v63 }
 0x117   :  { %v569_v14 = vadd.f32 %v1009_v53, %v568_v6  ;;  %v701_v16 = vadd.f32 %v700_v9, %v638_v8  ;;  %v643_v53 = vmul.f32 %v1045_v0, %v1045_v0  ;;  %v653_v8 = vmul.f32 %v1162_v7, %v1162_v7 }
 0x119   :  { %v702_v18 = vadd.f32 %v701_v16, %v639_v11  ;;  %v570_v22 = vadd.f32 %v1027_v57, %v569_v14  ;;  %v644_v57 = vmul.f32 %v1063_v10, %v1063_v10  ;;  %v654_v14 = vmul.f32 %v1180_v19, %v1180_v19 }
 0x11b   :  { %v571_v55 = vadd.f32 %v570_v22, %v1054_v5  ;;  %v703_v24 = vadd.f32 %v702_v18, %v640_v17 }
 0x11d   :  { %v704_v59 = vadd.f32 %v703_v24, %v641_v23  ;;  %v572_v27 = vadd.f32 %v571_v55, %v1072_v15  ;;  %v657_v55 = vmul.f32 %v1198_v32, %v1198_v32 }
 0x11f   :  { %v573_v31 = vadd.f32 %v1045_v0, %v572_v27  ;;  %v705_v33 = vadd.f32 %v704_v59, %v642_v29  ;;  %v647_v0 = vmul.f32 %v1081_v20, %v1081_v20  ;;  %v658_v59 = vmul.f32 %v1216_v44, %v1216_v44 }
 0x121   :  { %v706_v34 = vadd.f32 %v705_v33, %v643_v53  ;;  %v574_v37 = vadd.f32 %v1063_v10, %v573_v31  ;;  %v648_v10 = vmul.f32 %v1099_v30, %v1099_v30  ;;  %v661_v33 = vmul.f32 %v1234_v61, %v1234_v61 }
 0x123   :  { %v575_v5 = vadd.f32 %v574_v37, %v1090_v25  ;;  %v707_v41 = vadd.f32 %v706_v34, %v644_v57  ;;  %v662_v37 = vmul.f32 %v1252_v12, %v1252_v12 }
 0x125   :  { %v708_v42 = vadd.f32 %v707_v41, %v645_v39  ;;  %v576_v15 = vadd.f32 %v575_v5, %v1108_v35 }
 0x127   :  { %v577_v47 = vadd.f32 %v1081_v20, %v576_v15  ;;  %v709_v48 = vadd.f32 %v708_v42, %v646_v46  ;;  %v651_v20 = vmul.f32 %v1117_v40, %v1117_v40  ;;  %v665_v15 = vmul.f32 %v1270_v28, %v1270_v28 }
 0x129   :  { %v710_v49 = vadd.f32 %v709_v48, %v647_v0  ;;  %v578_v52 = vadd.f32 %v1099_v30, %v577_v47  ;;  %v652_v30 = vmul.f32 %v1135_v50, %v1135_v50  ;;  %v666_v47 = vmul.f32 %v1288_v43, %v1288_v43 }
 0x12b   :  { %v579_v25 = vadd.f32 %v578_v52, %v1126_v45  ;;  %v711_v56 = vadd.f32 %v710_v49, %v648_v10 }
 0x12d   :  { %v712_v60 = vadd.f32 %v711_v56, %v649_v54  ;;  %v580_v35 = vadd.f32 %v579_v25, %v1144_v58 }
 0x12f   :  { %v581_v63 = vadd.f32 %v1117_v40, %v580_v35  ;;  %v713_v2 = vadd.f32 %v712_v60, %v650_v62  ;;  %v655_v40 = vmul.f32 %v1153_v1, %v1153_v1 }
 0x131   :  { %v714_v3 = vadd.f32 %v713_v2, %v651_v20  ;;  %v582_v6 = vadd.f32 %v1135_v50, %v581_v63  ;;  %v656_v50 = vmul.f32 %v1171_v13, %v1171_v13 }
 0x133   :  { %v583_v45 = vadd.f32 %v582_v6, %v1162_v7  ;;  %v715_v9 = vadd.f32 %v714_v3, %v652_v30 }
 0x135   :  { %v716_v11 = vadd.f32 %v715_v9, %v653_v8  ;;  %v584_v58 = vadd.f32 %v583_v45, %v1180_v19 }
 0x137   :  { %v585_v16 = vadd.f32 %v1153_v1, %v584_v58  ;;  %v717_v17 = vadd.f32 %v716_v11, %v654_v14  ;;  %v659_v1 = vmul.f32 %v1189_v26, %v1189_v26 }
 0x139   :  { %v718_v18 = vadd.f32 %v717_v17, %v655_v40  ;;  %v586_v22 = vadd.f32 %v1171_v13, %v585_v16  ;;  %v660_v13 = vmul.f32 %v1207_v38, %v1207_v38 }
 0x13b   :  { %v587_v7 = vadd.f32 %v586_v22, %v1198_v32  ;;  %v719_v23 = vadd.f32 %v718_v18, %v656_v50 }
 0x13d   :  { %v720_v24 = vadd.f32 %v719_v23, %v657_v55  ;;  %v588_v19 = vadd.f32 %v587_v7, %v1216_v44 }
 0x13f   :  { %v589_v27 = vadd.f32 %v1189_v26, %v588_v19  ;;  %v721_v29 = vadd.f32 %v720_v24, %v658_v59  ;;  %v663_v26 = vmul.f32 %v1225_v51, %v1225_v51 }
 0x141   :  { %v722_v53 = vadd.f32 %v721_v29, %v659_v1  ;;  %v590_v31 = vadd.f32 %v1207_v38, %v589_v27  ;;  %v664_v38 = vmul.f32 %v1243_v4, %v1243_v4 }
 0x143   :  { %v591_v32 = vadd.f32 %v590_v31, %v1234_v61  ;;  %v723_v57 = vadd.f32 %v722_v53, %v660_v13 }
 0x145   :  { %v724_v34 = vadd.f32 %v723_v57, %v661_v33  ;;  %v592_v44 = vadd.f32 %v591_v32, %v1252_v12 }
 0x147   :  { %v593_v5 = vadd.f32 %v1225_v51, %v592_v44  ;;  %v725_v39 = vadd.f32 %v724_v34, %v662_v37  ;;  %v667_v51 = vmul.f32 %v1261_v21, %v1261_v21 }
 0x149   :  { %v726_v41 = vadd.f32 %v725_v39, %v663_v26  ;;  %v594_v42 = vadd.f32 %v1243_v4, %v593_v5  ;;  %v668_v4 = vmul.f32 %v1279_v36, %v1279_v36 }
 0x14b   :  { %v595_v61 = vadd.f32 %v594_v42, %v1270_v28  ;;  %v727_v46 = vadd.f32 %v726_v41, %v664_v38 }
 0x14d   :  { %v728_v0 = vadd.f32 %v727_v46, %v665_v15  ;;  %v596_v12 = vadd.f32 %v595_v61, %v1288_v43 }
 0x14f   :  { %v597_v48 = vadd.f32 %v1261_v21, %v596_v12  ;;  %v729_v10 = vadd.f32 %v728_v0, %v666_v47 }
 0x151   :  { %v598_v49 = vadd.f32 %v1279_v36, %v597_v48  ;;  %v730_v52 = vadd.f32 %v729_v10, %v667_v51 }
 0x153   :  { %v599_v28 = vrot.slane %v598_v49, 4  ;;  %v731_v25 = vadd.f32 %v730_v52, %v668_v4 }
 0x155   :  { %v600_v54 = vadd.f32 %v599_v28, %v598_v49  ;;  %v732_v56 = vrot.slane %v731_v25, 4 }
 0x157   :  { %v601_v60 = vrot.slane %v600_v54, 2  ;;  %v733_v35 = vadd.f32 %v732_v56, %v731_v25 }
 0x159   :  { %v602_v62 = vadd.f32 %v601_v60, %v600_v54  ;;  %v734_v43 = vrot.slane %v733_v35, 2 }
 0x15b   :  { %v603_v20 = vrot.slane %v602_v62, 1  ;;  %v735_v63 = vadd.f32 %v734_v43, %v733_v35 }
 0x15d   :  { %v736_v2 = vrot.slane %v735_v63, 1  ;;  %v604_v21 = vadd.f32 %v603_v20, %v602_v62 }
 0x15f   :  { %v737_v30 = vadd.f32 %v736_v2, %v735_v63 }
 0x161   :  { %v739_v3 = vsel %vm738_vm2, %v604_v21, %v737_v30 }
 0x162   :  { %740 = vst [vmem:[%s1399_s3] sm:$0x3] %v739_v3 }

</bundles_post_ra>
